<compile_context>
chip_gen: v6e
topology: v6e:2x2x1
jax: 0.10.0
libtpu: 0.0.40
codegen_flags: <defaults>
</compile_context>

<pallas_src>
import functools

import jax
import jax.numpy as jnp
from jax import lax
from jax.experimental import pallas as pl
from jax.experimental.pallas import tpu as pltpu


def _round_up(v, m):
    return (v + m - 1) // m * m


# --------------------------------------------------------------------------
# Pallas kernel: adjacency build + GCN norm + both SGConv layers, fully fused.
# --------------------------------------------------------------------------
def sgencoder_kernel(dst_ref, src_ref, x_ref, p_ref, o_ref, *,
                     cin, chid, r_b1, r_w2, r_b2):
    f32 = jnp.float32
    n = x_ref.shape[0]
    e = dst_ref.shape[1]

    # Adjacency via one-hot x one-hot MXU matmul.  Both one-hots are built
    # directly in the layout needed for a standard contraction (lhs last dim
    # with rhs first dim), so Mosaic inserts no transpose/relayout.
    # Self loops were appended host-side; padded edges use sentinel -1 which
    # never matches a node id, so they contribute nothing.
    dst = dst_ref[...]                                       # (1, E) int32
    src = src_ref[...]                                       # (E, 1) int32
    oh_dst = (lax.broadcasted_iota(jnp.int32, (n, e), 0) == dst
              ).astype(jnp.bfloat16)                         # (N, E)
    oh_src = (lax.broadcasted_iota(jnp.int32, (e, n), 1) == src
              ).astype(jnp.bfloat16)                         # (E, N)
    adj = jnp.dot(oh_dst, oh_src, preferred_element_type=f32)  # (N, N) counts

    # Symmetric GCN normalization; self loops guarantee deg >= 1 (no guard).
    deg = jnp.sum(adj, axis=1, keepdims=True)                # (N, 1)
    dinv = lax.rsqrt(deg)                                    # D^{-1/2}

    # Static views into the single packed parameter blob (one DMA, 4 params).
    w1 = p_ref[pl.ds(0, cin), :]                             # (Cin,  Chid)
    b1 = p_ref[pl.ds(r_b1, 1), :]                            # (1,    Chid)
    w2 = p_ref[pl.ds(r_w2, chid), :]                         # (Chid, Cout)
    b2 = p_ref[pl.ds(r_b2, 1), :]                            # (1,    Cout)

    x = x_ref[...]                                           # (N, Cin)

    # SGConv 1:  A_hat @ x == dinv * (adj @ (dinv * x)); linear + ReLU.
    p1 = jnp.dot(adj, x * dinv, preferred_element_type=f32) * dinv
    h1 = jnp.maximum(jnp.dot(p1, w1, preferred_element_type=f32) + b1, 0.0)

    # SGConv 2: propagate then linear (no activation).
    p2 = jnp.dot(adj, h1 * dinv, preferred_element_type=f32) * dinv
    h2 = jnp.dot(p2, w2, preferred_element_type=f32) + b2

    o_ref[...] = h2.astype(o_ref.dtype)


# --------------------------------------------------------------------------
# One-time host-side preparation (NOT in the per-call dispatch chain).
# --------------------------------------------------------------------------
def pack_params(gcn1_w, gcn1_b, gcn2_w, gcn2_b):
    """nn.Linear weights ([out,in]) + biases -> one contiguous f32 blob with
    8-sublane-aligned row offsets.  Done once at parameter-load time."""
    chid, cin = gcn1_w.shape
    cout, chid2 = gcn2_w.shape
    assert chid == chid2 and chid == cout, "blob packing assumes chid == cout"

    r_b1 = _round_up(cin, 8)                 # b1 row
    r_w2 = _round_up(r_b1 + 1, 8)            # W2 start row
    r_b2 = r_w2 + _round_up(chid, 8)         # b2 row
    rows = _round_up(r_b2 + 1, 8)

    blob = jnp.zeros((rows, chid), jnp.float32)
    blob = blob.at[0:cin, :].set(gcn1_w.T.astype(jnp.float32))
    blob = blob.at[r_b1, :].set(gcn1_b.astype(jnp.float32))
    blob = blob.at[r_w2:r_w2 + chid, :].set(gcn2_w.T.astype(jnp.float32))
    blob = blob.at[r_b2, :].set(gcn2_b.astype(jnp.float32))

    meta = dict(cin=cin, chid=chid, cout=cout,
                r_b1=r_b1, r_w2=r_w2, r_b2=r_b2)
    return blob, meta


def prepare_edges(edge_index, num_nodes):
    """Append self loops, pad to a lane-aligned E (multiple of 128) with
    sentinel -1, and pre-split into the layouts the kernel consumes
    (dst as (1,E) row, src as (E,1) column).  Done once per graph."""
    edge_index = jnp.asarray(edge_index, jnp.int32)          # host-side int32
    src, dst = edge_index[0], edge_index[1]
    loop = jnp.arange(num_nodes, dtype=jnp.int32)
    src = jnp.concatenate([src, loop])
    dst = jnp.concatenate([dst, loop])
    e = src.shape[0]
    e_pad = _round_up(max(e, 128), 128)
    src = jnp.pad(src, (0, e_pad - e), constant_values=-1)
    dst = jnp.pad(dst, (0, e_pad - e), constant_values=-1)
    return dst.reshape(1, e_pad), src.reshape(e_pad, 1)


# --------------------------------------------------------------------------
# Wrapper: single jitted executable containing the single Pallas kernel.
# --------------------------------------------------------------------------
def build_sg_encoder(meta):
    cin, chid, cout = meta["cin"], meta["chid"], meta["cout"]
    kernel = functools.partial(
        sgencoder_kernel, cin=cin, chid=chid,
        r_b1=meta["r_b1"], r_w2=meta["r_w2"], r_b2=meta["r_b2"])

    @jax.jit
    def forward(x, dst_row, src_col, params_blob):
        n = x.shape[0]
        e = dst_row.shape[1]

        flops = (2 * n * e * n                          # one-hot adjacency matmul
                 + 2 * n * n * cin + 2 * n * cin * chid   # SGConv 1
                 + 2 * n * n * chid + 2 * n * chid * cout)  # SGConv 2
        bytes_accessed = 4 * (2 * e + n * cin
                              + params_blob.shape[0] * params_blob.shape[1]
                              + n * cout)

        vmem = pl.BlockSpec(memory_space=pltpu.MemorySpace.VMEM)
        out = pl.pallas_call(
            kernel,
            out_shape=jax.ShapeDtypeStruct((n, cout), jnp.float32),
            in_specs=[vmem] * 4,
            out_specs=vmem,
            cost_estimate=pl.CostEstimate(
                flops=flops, transcendentals=n, bytes_accessed=bytes_accessed),
        )(dst_row, src_col, x, params_blob)

        # matches `x.view(1600)` in the reference (N=40, out_channels=40)
        return out.reshape(n * cout)

    return forward


# --------------------------------------------------------------------------
# Pure-JAX reference (scatter-based, independent code path) for sanity check.
# --------------------------------------------------------------------------
def sg_encoder_ref(x, edge_index, gcn1_w, gcn1_b, gcn2_w, gcn2_b):
    n = x.shape[0]
    src, dst = edge_index[0], edge_index[1]
    loop = jnp.arange(n, dtype=edge_index.dtype)
    src = jnp.concatenate([src, loop])
    dst = jnp.concatenate([dst, loop])
    adj = jnp.zeros((n, n), jnp.float32).at[dst, src].add(1.0)
    deg = adj.sum(axis=1)
    dinv = jnp.where(deg > 0, 1.0 / jnp.sqrt(deg), 0.0)
    a = dinv[:, None] * adj * dinv[None, :]
    h = jnp.maximum(a @ x @ gcn1_w.T + gcn1_b, 0.0)
    h2 = a @ h @ gcn2_w.T + gcn2_b
    return h2.reshape(-1)


if __name__ == "__main__":
    # Module constraints for exp=0: output.view(1600) => N=40, out_channels=40.
    N, CIN, CHID, COUT = 40, 40, 40, 40

    key = jax.random.PRNGKey(0)
    k_x, k_w1, k_b1, k_w2, k_b2 = jax.random.split(key, 5)

    # nn.Linear layout: W [out, in], b [out]
    gcn1_w = 0.1 * jax.random.normal(k_w1, (CHID, CIN), jnp.float32)
    gcn1_b = 0.1 * jax.random.normal(k_b1, (CHID,), jnp.float32)
    gcn2_w = 0.1 * jax.random.normal(k_w2, (COUT, CHID), jnp.float32)
    gcn2_b = 0.1 * jax.random.normal(k_b2, (COUT,), jnp.float32)

    # One-time packing / preparation (not in the per-call dispatch chain).
    params_blob, meta = pack_params(gcn1_w, gcn1_b, gcn2_w, gcn2_b)
    sg_encoder_forward = build_sg_encoder(meta)

    # node features [N, CIN]
    x = jax.random.normal(k_x, (N, CIN), jnp.float32)

    # deterministic bidirectional ring graph: edge_index [2, 2N] (PyG layout)
    idx = jnp.arange(N, dtype=jnp.int32)
    nxt = (idx + 1) % N
    edge_index = jnp.stack(
        [jnp.concatenate([idx, nxt]), jnp.concatenate([nxt, idx])], axis=0)

    dst_row, src_col = prepare_edges(edge_index, N)          # once per graph

    out = jax.block_until_ready(
        sg_encoder_forward(x, dst_row, src_col, params_blob))
    ref = sg_encoder_ref(x, edge_index, gcn1_w, gcn1_b, gcn2_w, gcn2_b)

    assert out.shape == (N * COUT,), out.shape
    assert jnp.allclose(out, ref, atol=1e-4, rtol=1e-4), "mismatch vs reference"

    print("KERNEL_OK")
</pallas_src>

<mosaic_0001>
module attributes {stable_mosaic.version = 11 : i64} {
  func.func @sgencoder_kernel(%arg0: memref<1x128xi32, #tpu.memory_space<vmem>>, %arg1: memref<128x1xi32, #tpu.memory_space<vmem>>, %arg2: memref<40x40xf32, #tpu.memory_space<vmem>>, %arg3: memref<96x40xf32, #tpu.memory_space<vmem>>, %arg4: memref<40x40xf32, #tpu.memory_space<vmem>>) attributes {dimension_semantics = [], scalar_prefetch = 0 : i64, scratch_operands = 0 : i64, tpu.core_type = #tpu.core_type<tc>} {
    %c0 = arith.constant 0 : index
    %c0_0 = arith.constant 0 : index
    %0 = vector.load %arg0[%c0, %c0_0] : memref<1x128xi32, #tpu.memory_space<vmem>>, vector<1x128xi32>
    %c0_1 = arith.constant 0 : index
    %c0_2 = arith.constant 0 : index
    %1 = vector.load %arg1[%c0_1, %c0_2] : memref<128x1xi32, #tpu.memory_space<vmem>>, vector<128x1xi32>
    %2 = tpu.iota {dimensions = array<i32: 0>} : vector<40x128xi32>
    %3 = vector.broadcast %0 : vector<1x128xi32> to vector<40x128xi32>
    %4 = arith.cmpi eq, %2, %3 : vector<40x128xi32>
    %5 = arith.extui %4 : vector<40x128xi1> to vector<40x128xi32>
    %6 = arith.sitofp %5 : vector<40x128xi32> to vector<40x128xf32>
    %7 = arith.truncf %6 : vector<40x128xf32> to vector<40x128xbf16>
    %8 = tpu.iota {dimensions = array<i32: 1>} : vector<128x40xi32>
    %9 = vector.broadcast %1 : vector<128x1xi32> to vector<128x40xi32>
    %10 = arith.cmpi eq, %8, %9 : vector<128x40xi32>
    %11 = arith.extui %10 : vector<128x40xi1> to vector<128x40xi32>
    %12 = arith.sitofp %11 : vector<128x40xi32> to vector<128x40xf32>
    %13 = arith.truncf %12 : vector<128x40xf32> to vector<128x40xbf16>
    %cst = arith.constant dense<0.000000e+00> : vector<40x40xf32>
    %14 = tpu.matmul %7, %13, %cst {dimension_numbers = #tpu.dot_dimension_numbers<[1], [0], [0], [1], [0, 0, 1, 1], [], []>} : vector<40x128xbf16>, vector<128x40xbf16>, vector<40x40xf32> -> vector<40x40xf32>
    %cst_3 = arith.constant dense<0.000000e+00> : vector<40xf32>
    %15 = vector.multi_reduction <add>, %14, %cst_3 [1] : vector<40x40xf32> to vector<40xf32>
    %16 = vector.shape_cast %15 : vector<40xf32> to vector<40x1xf32>
    %17 = math.rsqrt %16 : vector<40x1xf32>
    %c0_4 = arith.constant 0 : index
    %c0_5 = arith.constant 0 : index
    %18 = vector.load %arg3[%c0_4, %c0_5] : memref<96x40xf32, #tpu.memory_space<vmem>>, vector<40x40xf32>
    %c40 = arith.constant 40 : index
    %c0_6 = arith.constant 0 : index
    %19 = vector.load %arg3[%c40, %c0_6] : memref<96x40xf32, #tpu.memory_space<vmem>>, vector<1x40xf32>
    %c48 = arith.constant 48 : index
    %c0_7 = arith.constant 0 : index
    %20 = vector.load %arg3[%c48, %c0_7] : memref<96x40xf32, #tpu.memory_space<vmem>>, vector<40x40xf32>
    %c88 = arith.constant 88 : index
    %c0_8 = arith.constant 0 : index
    %21 = vector.load %arg3[%c88, %c0_8] : memref<96x40xf32, #tpu.memory_space<vmem>>, vector<1x40xf32>
    %c0_9 = arith.constant 0 : index
    %c0_10 = arith.constant 0 : index
    %22 = vector.load %arg2[%c0_9, %c0_10] : memref<40x40xf32, #tpu.memory_space<vmem>>, vector<40x40xf32>
    %23 = vector.broadcast %17 : vector<40x1xf32> to vector<40x40xf32>
    %24 = arith.mulf %22, %23 : vector<40x40xf32>
    %cst_11 = arith.constant dense<0.000000e+00> : vector<40x40xf32>
    %25 = tpu.matmul %14, %24, %cst_11 {dimension_numbers = #tpu.dot_dimension_numbers<[1], [0], [0], [1], [0, 0, 1, 1], [], []>} : vector<40x40xf32>, vector<40x40xf32>, vector<40x40xf32> -> vector<40x40xf32>
    %26 = vector.broadcast %17 : vector<40x1xf32> to vector<40x40xf32>
    %27 = arith.mulf %25, %26 : vector<40x40xf32>
    %cst_12 = arith.constant dense<0.000000e+00> : vector<40x40xf32>
    %28 = tpu.matmul %27, %18, %cst_12 {dimension_numbers = #tpu.dot_dimension_numbers<[1], [0], [0], [1], [0, 0, 1, 1], [], []>} : vector<40x40xf32>, vector<40x40xf32>, vector<40x40xf32> -> vector<40x40xf32>
    %29 = vector.broadcast %19 : vector<1x40xf32> to vector<40x40xf32>
    %30 = arith.addf %28, %29 : vector<40x40xf32>
    %cst_13 = arith.constant 0.000000e+00 : f32
    %31 = vector.broadcast %cst_13 : f32 to vector<40x40xf32>
    %32 = arith.maximumf %30, %31 : vector<40x40xf32>
    %33 = vector.broadcast %17 : vector<40x1xf32> to vector<40x40xf32>
    %34 = arith.mulf %32, %33 : vector<40x40xf32>
    %cst_14 = arith.constant dense<0.000000e+00> : vector<40x40xf32>
    %35 = tpu.matmul %14, %34, %cst_14 {dimension_numbers = #tpu.dot_dimension_numbers<[1], [0], [0], [1], [0, 0, 1, 1], [], []>} : vector<40x40xf32>, vector<40x40xf32>, vector<40x40xf32> -> vector<40x40xf32>
    %36 = vector.broadcast %17 : vector<40x1xf32> to vector<40x40xf32>
    %37 = arith.mulf %35, %36 : vector<40x40xf32>
    %cst_15 = arith.constant dense<0.000000e+00> : vector<40x40xf32>
    %38 = tpu.matmul %37, %20, %cst_15 {dimension_numbers = #tpu.dot_dimension_numbers<[1], [0], [0], [1], [0, 0, 1, 1], [], []>} : vector<40x40xf32>, vector<40x40xf32>, vector<40x40xf32> -> vector<40x40xf32>
    %39 = vector.broadcast %21 : vector<1x40xf32> to vector<40x40xf32>
    %40 = arith.addf %38, %39 : vector<40x40xf32>
    %c0_16 = arith.constant 0 : index
    %c0_17 = arith.constant 0 : index
    %41 = vector.load %arg4[%c0_16, %c0_17] : memref<40x40xf32, #tpu.memory_space<vmem>>, vector<40x40xf32>
    tpu.vector_store %arg4[%c0_16, %c0_17], %40 {strides = array<i32>} : memref<40x40xf32, #tpu.memory_space<vmem>>, vector<40x40xf32>,
    return
  }
}

</mosaic_0001>

<bundles_post_ra>
// kernel: forward.1
= control target key start
LH: loop header
LB: loop body
LE: loop exit
PB: predicated region body
PF: predicated region fallthrough
CT: control target
= control target key end

     0   :  { %v971_v0 = vmov 0   ;;  %v972_v5 = vmov 0.0   ;;  %vm973_vm0 = vmmov 0   ;;  %v35_v18 = vlaneseq  ;;  %s1287_s1 = inlined_call_operand.vmem [shape: s32[128,1], index: 1, kind: input, shape index: {}]   ;;  %s1288_s0 = inlined_call_operand.vmem [shape: s32[1,128], index: 0, kind: input, shape index: {}]   ;;  %s1289_s2 = inlined_call_operand.vmem [shape: f32[40,40], index: 2, kind: input, shape index: {}]   ;;  %s1290_s3 = inlined_call_operand.vmem [shape: f32[96,40], index: 3, kind: input, shape index: {}]   ;;  %s1291_s4 = inlined_call_operand.vmem [shape: f32[40,40], index: 4, kind: output, shape index: {}]  }
   0x1   :  { %960 = vset.pattern.permute.xlu1 %v971_v0  ;;  %959 = vset.pattern.permute.xlu0 %v971_v0  ;;  %v33_v1 = vld [vmem:[%s1287_s1 + $0x70] sm:$0xff]  ;;  %v31_v2 = vld [vmem:[%s1287_s1 + $0x60] sm:$0xff]  ;;  %v34_v3 = vld [vmem:[%s1287_s1 + $0x78] sm:$0xff]  ;;  %v974_v24 = vmov 1.0|1.0  }
   0x2   :  { %108 = vperm.xlu0 %959, %v33_v1   ;;  %102 = vperm.xlu1 %960, %v31_v2   ;;  %v32_v4 = vld [vmem:[%s1287_s1 + $0x68] sm:$0xff]  ;;  %v30_v6 = vld [vmem:[%s1287_s1 + $0x58] sm:$0xff]  ;;  %v29_v7 = vld [vmem:[%s1287_s1 + $0x50] sm:$0xff]  ;;  %v64_v21 = vand.u32 127, %v35_v18  ;;  %v36_v35 = vshrl.u32 %v35_v18, 7 }
   0x3   :  { %827 = vmatprep.subr.bf16.mxu0 %v972_v5  ;;  %855 = vmatprep.subr.mxu1 %v972_v5  ;;  %v28_v8 = vld [vmem:[%s1287_s1 + $0x48] sm:$0xff]  ;;  %v27_v9 = vld [vmem:[%s1287_s1 + $0x40] sm:$0xff]  ;;  %v26_v10 = vld [vmem:[%s1287_s1 + $0x38] sm:$0xff] }
   0x4   :  { %v25_v11 = vld [vmem:[%s1287_s1 + $0x30] sm:$0xff]  ;;  %v24_v12 = vld [vmem:[%s1287_s1 + $0x28] sm:$0xff]  ;;  %v23_v13 = vld [vmem:[%s1287_s1 + $0x20] sm:$0xff]  ;;  %843 = vmatprep.mubr.msk.bf16.mxu0 %vm973_vm0, %v972_v5  ;;  %865 = vmatprep.mubr.msk.f32.mxu1 %vm973_vm0, %v972_v5  ;;  %v37_v38 = vadd.s32 8, %v36_v35  ;;  %v38_v40 = vadd.s32 16, %v36_v35  ;;  %v39_v41 = vadd.s32 24, %v36_v35 }
   0x5   :  { %v22_v14 = vld [vmem:[%s1287_s1 + $0x18] sm:$0xff]  ;;  %v21_v15 = vld [vmem:[%s1287_s1 + $0x10] sm:$0xff]  ;;  %v20_v16 = vld [vmem:[%s1287_s1 + $0x8] sm:$0xff]  ;;  %v40_v42 = vadd.s32 32, %v36_v35 }
   0x6   :  { %111 = vperm.xlu0 %959, %v34_v3   ;;  %105 = vperm.xlu1 %960, %v32_v4   ;;  %v19_v17 = vld [vmem:[%s1287_s1] sm:$0xff]  ;;  %v261_v4 = vld [vmem:[%s1289_s2 + $0x18] sm:$0xff] }
   0x7   :  { %v710_v39 = vld [vmem:[%s1288_s0] ss:$0 sm:$0xff]  ;;  %v249_v18 = vld [vmem:[%s1290_s3 + $0x18] sm:$0xff] }
   0x8   :  { %v262_v1 = vld [vmem:[%s1289_s2 + $0x20] sm:$0xff] }
   0xa   :  { %99 = vperm.xlu1 %960, %v30_v6   ;;  %96 = vperm.xlu0 %959, %v29_v7   ;;  %v260_v7 = vld [vmem:[%s1289_s2 + $0x10] sm:$0xff] }
   0xe   :  { %93 = vperm.xlu1 %960, %v28_v8   ;;  %90 = vperm.xlu0 %959, %v27_v9  }
  0x12   :  { %87 = vperm.xlu1 %960, %v26_v10   ;;  %84 = vperm.xlu0 %959, %v25_v11   ;;  %v259_v11 = vld [vmem:[%s1289_s2 + $0x8] sm:$0xff] }
  0x16   :  { %81 = vperm.xlu1 %960, %v24_v12   ;;  %78 = vperm.xlu0 %959, %v23_v13  }
  0x1a   :  { %75 = vperm.xlu1 %960, %v22_v14   ;;  %72 = vperm.xlu0 %959, %v21_v15   ;;  %v258_v14 = vld [vmem:[%s1289_s2] sm:$0xff] }
  0x1e   :  { %69 = vperm.xlu1 %960, %v20_v16   ;;  %66 = vperm.xlu0 %959, %v19_v17   ;;  %v250_v17 = vld [vmem:[%s1290_s3 + $0x20] sm:$0xff] }
  0x7d   :  { %v109_v19 = vpop.permute.xlu0 %108  ;;  %v103_v20 = vpop.permute.xlu1 %102 }
  0x7e   :  { %vm127_vm1 = vcmp.eq.s32.totalorder %v64_v21, %v109_v19  ;;  %vm125_vm4 = vcmp.eq.s32.totalorder %v64_v21, %v103_v20  ;;  %v248_v19 = vld [vmem:[%s1290_s3 + $0x10] sm:$0xff]  ;;  %v247_v20 = vld [vmem:[%s1290_s3 + $0x8] sm:$0xff] }
  0x81   :  { %v112_v22 = vpop.permute.xlu0 %111  ;;  %v106_v23 = vpop.permute.xlu1 %105 }
  0x82   :  { %vm128_vm2 = vcmp.eq.s32.totalorder %v64_v21, %v112_v22  ;;  %vm126_vm5 = vcmp.eq.s32.totalorder %v64_v21, %v106_v23 }
  0x83   :  { %vm732_vm3 = vmpackc.low %vm128_vm2, %vm127_vm1 }
  0x84   :  { %828 = vmatpush3.bf16.msk.msra.mxu0 %vm732_vm3, %v974_v24  ;;  %vm734_vm6 = vmpackc.low %vm126_vm5, %vm125_vm4 }
  0x85   :  { %v100_v25 = vpop.permute.xlu1 %99  ;;  %v97_v26 = vpop.permute.xlu0 %96  ;;  %829 = vmatprep.subr.bf16.mxu0 %v972_v5 }
  0x86   :  { %vm124_vm7 = vcmp.eq.s32.totalorder %v64_v21, %v100_v25  ;;  %vm123_vm8 = vcmp.eq.s32.totalorder %v64_v21, %v97_v26 }
  0x87   :  { %vm736_vm9 = vmpackc.low %vm124_vm7, %vm123_vm8 }
  0x88   :  { %830 = vmatpush3.bf16.msk.msra.mxu0 %vm734_vm6, %v974_v24 }
  0x89   :  { %v94_v27 = vpop.permute.xlu1 %93  ;;  %v91_v28 = vpop.permute.xlu0 %90  ;;  %831 = vmatprep.subr.bf16.mxu0 %v972_v5 }
  0x8a   :  { %vm122_vm10 = vcmp.eq.s32.totalorder %v64_v21, %v94_v27  ;;  %vm121_vm11 = vcmp.eq.s32.totalorder %v64_v21, %v91_v28 }
  0x8b   :  { %vm738_vm12 = vmpackc.low %vm122_vm10, %vm121_vm11  ;;  %vm46_vm10 = vcmp.eq.s32.totalorder %v37_v38, %v710_v39  ;;  %v255_v38 = vld [vmem:[%s1290_s3 + $0x48] sm:$0xff] }
  0x8c   :  { %832 = vmatpush3.bf16.msk.msra.mxu0 %vm736_vm9, %v974_v24  ;;  %vm45_vm9 = vcmp.eq.s32.totalorder %v36_v35, %v710_v39 }
  0x8d   :  { %v88_v29 = vpop.permute.xlu1 %87  ;;  %v85_v30 = vpop.permute.xlu0 %84  ;;  %833 = vmatprep.subr.bf16.mxu0 %v972_v5 }
  0x8e   :  { %vm120_vm13 = vcmp.eq.s32.totalorder %v64_v21, %v88_v29  ;;  %vm119_vm14 = vcmp.eq.s32.totalorder %v64_v21, %v85_v30 }
  0x8f   :  { %vm740_vm15 = vmpackc.low %vm120_vm13, %vm119_vm14  ;;  %vm47_vm13 = vcmp.eq.s32.totalorder %v38_v40, %v710_v39  ;;  %vm48_vm14 = vcmp.eq.s32.totalorder %v39_v41, %v710_v39 }
  0x90   :  { %834 = vmatpush3.bf16.msk.msra.mxu0 %vm738_vm12, %v974_v24  ;;  %vm748_vm12 = vmpackc.low %vm46_vm10, %vm45_vm9 }
  0x91   :  { %v82_v31 = vpop.permute.xlu1 %81  ;;  %v79_v32 = vpop.permute.xlu0 %78  ;;  %835 = vmatprep.subr.bf16.mxu0 %v972_v5 }
  0x92   :  { %vm118_vm1 = vcmp.eq.s32.totalorder %v64_v21, %v82_v31  ;;  %vm117_vm2 = vcmp.eq.s32.totalorder %v64_v21, %v79_v32 }
  0x93   :  { %vm742_vm3 = vmpackc.low %vm118_vm1, %vm117_vm2  ;;  %vm49_vm1 = vcmp.eq.s32.totalorder %v40_v42, %v710_v39  ;;  %v254_v39 = vld [vmem:[%s1290_s3 + $0x40] sm:$0xff] }
  0x94   :  { %836 = vmatpush3.bf16.msk.msra.mxu0 %vm740_vm15, %v974_v24  ;;  %vm750_vm15 = vmpackc.low %vm48_vm14, %vm47_vm13 }
  0x95   :  { %v76_v33 = vpop.permute.xlu1 %75  ;;  %v73_v34 = vpop.permute.xlu0 %72  ;;  %837 = vmatprep.subr.bf16.mxu0 %v972_v5  ;;  %vm752_vm2 = vmpackc.low %vm49_vm1, %vm49_vm1 }
  0x96   :  { %vm116_vm4 = vcmp.eq.s32.totalorder %v64_v21, %v76_v33  ;;  %vm115_vm5 = vcmp.eq.s32.totalorder %v64_v21, %v73_v34 }
  0x97   :  { %vm744_vm6 = vmpackc.low %vm116_vm4, %vm115_vm5 }
  0x98   :  { %838 = vmatpush3.bf16.msk.msra.mxu0 %vm742_vm3, %v974_v24  ;;  %vm225_vm3 = vcmask 326656  }
  0x99   :  { %v70_v36 = vpop.permute.xlu1 %69  ;;  %v67_v37 = vpop.permute.xlu0 %66  ;;  %839 = vmatprep.subr.bf16.mxu0 %v972_v5 }
  0x9a   :  { %vm114_vm7 = vcmp.eq.s32.totalorder %v64_v21, %v70_v36  ;;  %vm113_vm8 = vcmp.eq.s32.totalorder %v64_v21, %v67_v37  ;;  %v246_v21 = vld [vmem:[%s1290_s3] sm:$0xff]  ;;  %v256_v37 = vld [vmem:[%s1290_s3 + $0x50] sm:$0xff] }
  0x9b   :  { %vm746_vm11 = vmpackc.low %vm114_vm7, %vm113_vm8 }
  0x9c   :  { %840 = vmatpush3.bf16.msk.msra.mxu0 %vm744_vm6, %v974_v24 }
  0x9d   :  { %841 = vmatprep.subr.bf16.mxu0 %v972_v5 }
  0xa0   :  { %842 = vmatpush3.bf16.msk.msra.mxu0 %vm746_vm11, %v974_v24 }
  0xa1   :  { %930 = vmatprep.subr.mxu0 %v972_v5 }
  0xa3   :  { %844 = vmatmul.mubr.msk.bf16.vlgmr.msra.gmra.mxu0 %vm748_vm12, %v974_v24 }
  0xa4   :  { %847 = vmatprep.mubr.msk.bf16.mxu0 %vm973_vm0, %v972_v5  ;;  %931 = vmatpush3.msra.mxu0 %v256_v37 }
  0xa5   :  { %932 = vmatprep.subr.mxu0 %v972_v5 }
  0xa6   :  { %933 = vmatpush3.msra.mxu0 %v255_v38 }
  0xa7   :  { %934 = vmatprep.subr.mxu0 %v972_v5 }
  0xa8   :  { %935 = vmatpush3.msra.mxu0 %v254_v39 }
  0xa9   :  { %936 = vmatprep.subr.mxu0 %v972_v5 }
  0xab   :  { %848 = vmatmul.mubr.msk.bf16.gmra.mxu0 %vm750_vm15, %v974_v24 }
  0xac   :  { %851 = vmatprep.mubr.msk.bf16.mxu0 %vm973_vm0, %v972_v5 }
  0xb3   :  { %852 = vmatmul.mubr.msk.bf16.gmra.mxu0 %vm752_vm2, %v974_v24 }
  0xb4   :  { %940 = vmatprep.mubr.msk.f32.mxu0 %vm973_vm0, %v972_v5 }
 0x163   :  { %v1082_v43 = vpop.f32.mrf.mxu0 }
 0x164   :  { %v226_v53 = vsel %vm225_vm3, %v1082_v43, 0.0 }
 0x165   :  { %v845_v44 = vpop.f32.mrf.mxu0 }
 0x167   :  { %v1084_v45 = vpop.f32.mrf.mxu0 }
 0x168   :  { %v229_v59 = vsel %vm225_vm3, %v1084_v45, 0.0 }
 0x169   :  { %v846_v46 = vpop.f32.mrf.mxu0 }
 0x16b   :  { %v1086_v47 = vpop.f32.mrf.mxu0 }
 0x16c   :  { %v232_v57 = vsel %vm225_vm3, %v1086_v47, 0.0 }
 0x16d   :  { %v849_v48 = vpop.f32.mrf.mxu0 }
 0x16f   :  { %v1088_v49 = vpop.f32.mrf.mxu0 }
 0x170   :  { %v235_v50 = vsel %vm225_vm3, %v1088_v49, 0.0 }
 0x171   :  { %236 = vadd.xlane.f32.xlu1 %v235_v50  ;;  %v850_v51 = vpop.f32.mrf.mxu0 }
 0x172   :  { %v759_v51 = vld [vmem:[%s1290_s3 + $0x28] ss:$0 sm:$0xff] }
 0x173   :  { %v1092_v52 = vpop.f32.mrf.mxu0 }
 0x174   :  { %v238_v54 = vsel %vm225_vm3, %v1092_v52, 0.0 }
 0x175   :  { %227 = vadd.xlane.f32.xlu1 %v226_v53  ;;  %239 = vadd.xlane.f32.xlu0 %v238_v54  ;;  %v853_v55 = vpop.f32.mrf.mxu0 }
 0x177   :  { %v222_v56 = vpop.f32.mrf.mxu0 }
 0x179   :  { %233 = vadd.xlane.f32.xlu0 %v232_v57  ;;  %v854_v58 = vpop.f32.mrf.mxu0 }
 0x17d   :  { %230 = vadd.xlane.f32.xlu0 %v229_v59 }
 0x1fa   :  { %v237_v60 = vpop.xlane.xlu1 %236 }
 0x1fb   :  { %961 = vrsqrt.f32 %v237_v60 }
 0x1fe   :  { %v240_v61 = vpop.xlane.xlu0 %239  ;;  %v228_v63 = vpop.xlane.xlu1 %227 }
 0x1ff   :  { %963 = vrsqrt.f32 %v240_v61 }
 0x202   :  { %v234_v62 = vpop.xlane.xlu0 %233 }
 0x203   :  { %965 = vrsqrt.f32 %v234_v62 }
 0x204   :  { %967 = vrsqrt.f32 %v228_v63 }
 0x206   :  { %v231_v0 = vpop.xlane.xlu0 %230 }
 0x207   :  { %969 = vrsqrt.f32 %v231_v0 }
 0x208   :  { %v1105_v2 = vpop.eup %961 }
 0x209   :  { %v266_v9 = vmul.f32 %v1105_v2, %v261_v4 }
 0x20c   :  { %v1107_v3 = vpop.eup %963 }
 0x20d   :  { %v267_v6 = vmul.f32 %v1107_v3, %v262_v1 }
 0x20f   :  { %856 = vmatpush3.msra.mxu1 %v267_v6 }
 0x210   :  { %v1116_v8 = vpop.eup %965  ;;  %857 = vmatprep.subr.mxu1 %v972_v5 }
 0x211   :  { %v265_v10 = vmul.f32 %v1116_v8, %v260_v7  ;;  %858 = vmatpush3.msra.mxu1 %v266_v9  ;;  %v1124_v12 = vpop.eup %967 }
 0x212   :  { %859 = vmatprep.subr.mxu1 %v972_v5  ;;  %v263_v16 = vmul.f32 %v1124_v12, %v258_v14 }
 0x213   :  { %860 = vmatpush3.msra.mxu1 %v265_v10 }
 0x214   :  { %v1127_v13 = vpop.eup %969  ;;  %861 = vmatprep.subr.mxu1 %v972_v5 }
 0x215   :  { %v264_v15 = vmul.f32 %v1127_v13, %v259_v11 }
 0x217   :  { %862 = vmatpush3.msra.mxu1 %v264_v15 }
 0x218   :  { %863 = vmatprep.subr.mxu1 %v972_v5 }
 0x219   :  { %864 = vmatpush3.msra.mxu1 %v263_v16 }
 0x21a   :  { %866 = vmatmul.mubr.msk.f32.vlgmr.msra.gmra.mxu1 %vm225_vm3, %v1082_v43  ;;  %880 = vmatprep.subr.mxu1 %v972_v5 }
 0x21b   :  { %868 = vmatprep.mubr.msk.f32.mxu1 %vm973_vm0, %v972_v5  ;;  %881 = vmatpush3.msra.mxu1 %v250_v17 }
 0x21c   :  { %882 = vmatprep.subr.mxu1 %v972_v5 }
 0x21d   :  { %883 = vmatpush3.msra.mxu1 %v249_v18 }
 0x21e   :  { %869 = vmatmul.mubr.msk.f32.gmra.mxu1 %vm225_vm3, %v1084_v45  ;;  %884 = vmatprep.subr.mxu1 %v972_v5 }
 0x21f   :  { %871 = vmatprep.mubr.msk.f32.mxu1 %vm973_vm0, %v972_v5  ;;  %885 = vmatpush3.msra.mxu1 %v248_v19 }
 0x220   :  { %886 = vmatprep.subr.mxu1 %v972_v5 }
 0x221   :  { %887 = vmatpush3.msra.mxu1 %v247_v20 }
 0x222   :  { %872 = vmatmul.mubr.msk.f32.gmra.mxu1 %vm225_vm3, %v1086_v47  ;;  %888 = vmatprep.subr.mxu1 %v972_v5 }
 0x223   :  { %874 = vmatprep.mubr.msk.f32.mxu1 %vm973_vm0, %v972_v5  ;;  %889 = vmatpush3.msra.mxu1 %v246_v21 }
 0x224   :  { %905 = vmatprep.subr.mxu1 %v972_v5 }
 0x226   :  { %875 = vmatmul.mubr.msk.f32.gmra.mxu1 %vm225_vm3, %v1088_v49 }
 0x227   :  { %877 = vmatprep.mubr.msk.f32.mxu1 %vm973_vm0, %v972_v5 }
 0x22a   :  { %878 = vmatmul.mubr.msk.f32.gmra.mxu1 %vm225_vm3, %v1092_v52 }
 0x22b   :  { %890 = vmatprep.mubr.msk.f32.mxu1 %vm973_vm0, %v972_v5 }
 0x2da   :  { %v349_v22 = vpop.f32.mrf.mxu1 }
 0x2db   :  { %v373_v23 = vmul.f32 %v1124_v12, %v349_v22 }
 0x2dc   :  { %v867_v24 = vpop.f32.mrf.mxu1 }
 0x2dd   :  { %891 = vmatmul.mubr.msk.f32.vlgmr.msra.gmra.mxu1 %vm225_vm3, %v373_v23 }
 0x2de   :  { %v354_v25 = vpop.f32.mrf.mxu1  ;;  %893 = vmatprep.mubr.msk.f32.mxu1 %vm973_vm0, %v972_v5 }
 0x2df   :  { %v374_v26 = vmul.f32 %v1127_v13, %v354_v25 }
 0x2e0   :  { %v870_v27 = vpop.f32.mrf.mxu1 }
 0x2e1   :  { %894 = vmatmul.mubr.msk.f32.gmra.mxu1 %vm225_vm3, %v374_v26 }
 0x2e2   :  { %v359_v28 = vpop.f32.mrf.mxu1  ;;  %896 = vmatprep.mubr.msk.f32.mxu1 %vm973_vm0, %v972_v5 }
 0x2e3   :  { %v375_v29 = vmul.f32 %v1116_v8, %v359_v28 }
 0x2e4   :  { %v873_v30 = vpop.f32.mrf.mxu1 }
 0x2e5   :  { %897 = vmatmul.mubr.msk.f32.gmra.mxu1 %vm225_vm3, %v375_v29 }
 0x2e6   :  { %v364_v31 = vpop.f32.mrf.mxu1  ;;  %899 = vmatprep.mubr.msk.f32.mxu1 %vm973_vm0, %v972_v5 }
 0x2e7   :  { %v376_v32 = vmul.f32 %v1105_v2, %v364_v31 }
 0x2e8   :  { %v876_v33 = vpop.f32.mrf.mxu1 }
 0x2e9   :  { %900 = vmatmul.mubr.msk.f32.gmra.mxu1 %vm225_vm3, %v376_v32 }
 0x2ea   :  { %v369_v34 = vpop.f32.mrf.mxu1  ;;  %902 = vmatprep.mubr.msk.f32.mxu1 %vm973_vm0, %v972_v5 }
 0x2eb   :  { %v377_v35 = vmul.f32 %v1107_v3, %v369_v34 }
 0x2ec   :  { %v879_v36 = vpop.f32.mrf.mxu1 }
 0x2ed   :  { %903 = vmatmul.mubr.msk.f32.gmra.mxu1 %vm225_vm3, %v377_v35 }
 0x2ee   :  { %915 = vmatprep.mubr.msk.f32.mxu1 %vm973_vm0, %v972_v5 }
 0x39d   :  { %v463_v40 = vpop.f32.mrf.mxu1 }
 0x39e   :  { %v464_v62 = vadd.f32 %v759_v51, %v463_v40 }
 0x39f   :  { %v892_v41 = vpop.f32.mrf.mxu1 }
 0x3a0   :  { %v487_v6 = vmax.f32 %v464_v62, 0.0 }
 0x3a1   :  { %v468_v42 = vpop.f32.mrf.mxu1 }
 0x3a2   :  { %v469_v59 = vadd.f32 %v759_v51, %v468_v42  ;;  %v492_v10 = vmul.f32 %v1124_v12, %v487_v6 }
 0x3a3   :  { %v895_v44 = vpop.f32.mrf.mxu1 }
 0x3a4   :  { %v488_v1 = vmax.f32 %v469_v59, 0.0 }
 0x3a5   :  { %v473_v46 = vpop.f32.mrf.mxu1 }
 0x3a6   :  { %v474_v56 = vadd.f32 %v759_v51, %v473_v46  ;;  %v493_v9 = vmul.f32 %v1127_v13, %v488_v1 }
 0x3a7   :  { %v898_v48 = vpop.f32.mrf.mxu1 }
 0x3a8   :  { %v489_v63 = vmax.f32 %v474_v56, 0.0 }
 0x3a9   :  { %v478_v50 = vpop.f32.mrf.mxu1 }
 0x3aa   :  { %v479_v54 = vadd.f32 %v759_v51, %v478_v50  ;;  %v494_v7 = vmul.f32 %v1116_v8, %v489_v63 }
 0x3ab   :  { %v901_v53 = vpop.f32.mrf.mxu1 }
 0x3ac   :  { %v490_v60 = vmax.f32 %v479_v54, 0.0 }
 0x3ad   :  { %v483_v55 = vpop.f32.mrf.mxu1 }
 0x3ae   :  { %v484_v57 = vadd.f32 %v759_v51, %v483_v55  ;;  %v495_v4 = vmul.f32 %v1105_v2, %v490_v60 }
 0x3af   :  { %v904_v58 = vpop.f32.mrf.mxu1 }
 0x3b0   :  { %v491_v61 = vmax.f32 %v484_v57, 0.0 }
 0x3b2   :  { %v496_v0 = vmul.f32 %v1107_v3, %v491_v61 }
 0x3b4   :  { %906 = vmatpush3.msra.mxu1 %v496_v0 }
 0x3b5   :  { %907 = vmatprep.subr.mxu1 %v972_v5 }
 0x3b6   :  { %908 = vmatpush3.msra.mxu1 %v495_v4 }
 0x3b7   :  { %909 = vmatprep.subr.mxu1 %v972_v5 }
 0x3b8   :  { %910 = vmatpush3.msra.mxu1 %v494_v7 }
 0x3b9   :  { %911 = vmatprep.subr.mxu1 %v972_v5 }
 0x3ba   :  { %912 = vmatpush3.msra.mxu1 %v493_v9 }
 0x3bb   :  { %913 = vmatprep.subr.mxu1 %v972_v5 }
 0x3bc   :  { %914 = vmatpush3.msra.mxu1 %v492_v10 }
 0x3bd   :  { %916 = vmatmul.mubr.msk.f32.vlgmr.msra.gmra.mxu1 %vm225_vm3, %v1082_v43  ;;  %v253_v43 = vld [vmem:[%s1290_s3 + $0x38] sm:$0xff] }
 0x3be   :  { %918 = vmatprep.mubr.msk.f32.mxu1 %vm973_vm0, %v972_v5  ;;  %937 = vmatpush3.msra.mxu0 %v253_v43 }
 0x3bf   :  { %938 = vmatprep.subr.mxu0 %v972_v5 }
 0x3c1   :  { %919 = vmatmul.mubr.msk.f32.gmra.mxu1 %vm225_vm3, %v1084_v45  ;;  %v252_v45 = vld [vmem:[%s1290_s3 + $0x30] sm:$0xff] }
 0x3c2   :  { %921 = vmatprep.mubr.msk.f32.mxu1 %vm973_vm0, %v972_v5  ;;  %939 = vmatpush3.msra.mxu0 %v252_v45 }
 0x3c5   :  { %922 = vmatmul.mubr.msk.f32.gmra.mxu1 %vm225_vm3, %v1086_v47 }
 0x3c6   :  { %924 = vmatprep.mubr.msk.f32.mxu1 %vm973_vm0, %v972_v5 }
 0x3c9   :  { %925 = vmatmul.mubr.msk.f32.gmra.mxu1 %vm225_vm3, %v1088_v49 }
 0x3ca   :  { %927 = vmatprep.mubr.msk.f32.mxu1 %vm973_vm0, %v972_v5 }
 0x3cd   :  { %928 = vmatmul.mubr.msk.f32.gmra.mxu1 %vm225_vm3, %v1092_v52 }
 0x47d   :  { %v563_v47 = vpop.f32.mrf.mxu1 }
 0x47e   :  { %v587_v49 = vmul.f32 %v1124_v12, %v563_v47 }
 0x47f   :  { %v917_v11 = vpop.f32.mrf.mxu1 }
 0x480   :  { %941 = vmatmul.mubr.msk.f32.vlgmr.msra.gmra.mxu0 %vm225_vm3, %v587_v49 }
 0x481   :  { %v568_v14 = vpop.f32.mrf.mxu1  ;;  %943 = vmatprep.mubr.msk.f32.mxu0 %vm973_vm0, %v972_v5 }
 0x482   :  { %v588_v52 = vmul.f32 %v1127_v13, %v568_v14 }
 0x483   :  { %v920_v15 = vpop.f32.mrf.mxu1 }
 0x484   :  { %944 = vmatmul.mubr.msk.f32.gmra.mxu0 %vm225_vm3, %v588_v52 }
 0x485   :  { %v573_v16 = vpop.f32.mrf.mxu1  ;;  %946 = vmatprep.mubr.msk.f32.mxu0 %vm973_vm0, %v972_v5 }
 0x486   :  { %v589_v17 = vmul.f32 %v1116_v8, %v573_v16  ;;  %v770_v8 = vld [vmem:[%s1290_s3 + $0x58] ss:$0 sm:$0xff] }
 0x487   :  { %v923_v18 = vpop.f32.mrf.mxu1 }
 0x488   :  { %947 = vmatmul.mubr.msk.f32.gmra.mxu0 %vm225_vm3, %v589_v17 }
 0x489   :  { %v578_v12 = vpop.f32.mrf.mxu1  ;;  %949 = vmatprep.mubr.msk.f32.mxu0 %vm973_vm0, %v972_v5 }
 0x48a   :  { %v590_v19 = vmul.f32 %v1105_v2, %v578_v12 }
 0x48b   :  { %v926_v20 = vpop.f32.mrf.mxu1 }
 0x48c   :  { %950 = vmatmul.mubr.msk.f32.gmra.mxu0 %vm225_vm3, %v590_v19 }
 0x48d   :  { %v583_v13 = vpop.f32.mrf.mxu1  ;;  %952 = vmatprep.mubr.msk.f32.mxu0 %vm973_vm0, %v972_v5 }
 0x48e   :  { %v591_v21 = vmul.f32 %v1107_v3, %v583_v13 }
 0x48f   :  { %v929_v22 = vpop.f32.mrf.mxu1 }
 0x490   :  { %953 = vmatmul.mubr.msk.f32.gmra.mxu0 %vm225_vm3, %v591_v21 }
 0x540   :  { %v677_v23 = vpop.f32.mrf.mxu0 }
 0x541   :  { %v678_v24 = vadd.f32 %v770_v8, %v677_v23 }
 0x542   :  { %v942_v25 = vpop.f32.mrf.mxu0 }
 0x543   :  { %701 = vst.msk [vmem:[%s1291_s4] sm:$0xff] %vm225_vm3, %v678_v24 }
 0x544   :  { %v682_v2 = vpop.f32.mrf.mxu0 }
 0x545   :  { %v683_v26 = vadd.f32 %v770_v8, %v682_v2 }
 0x546   :  { %v945_v5 = vpop.f32.mrf.mxu0 }
 0x547   :  { %702 = vst.msk [vmem:[%s1291_s4 + $0x8] sm:$0xff] %vm225_vm3, %v683_v26 }
 0x548   :  { %v687_v3 = vpop.f32.mrf.mxu0 }
 0x549   :  { %v688_v27 = vadd.f32 %v770_v8, %v687_v3 }
 0x54a   :  { %v948_v28 = vpop.f32.mrf.mxu0 }
 0x54b   :  { %703 = vst.msk [vmem:[%s1291_s4 + $0x10] sm:$0xff] %vm225_vm3, %v688_v27 }
 0x54c   :  { %v692_v29 = vpop.f32.mrf.mxu0 }
 0x54d   :  { %v693_v30 = vadd.f32 %v770_v8, %v692_v29 }
 0x54e   :  { %v951_v31 = vpop.f32.mrf.mxu0 }
 0x54f   :  { %704 = vst.msk [vmem:[%s1291_s4 + $0x18] sm:$0xff] %vm225_vm3, %v693_v30 }
 0x550   :  { %v697_v32 = vpop.f32.mrf.mxu0 }
 0x551   :  { %v698_v33 = vadd.f32 %v770_v8, %v697_v32 }
 0x552   :  { %v954_v34 = vpop.f32.mrf.mxu0 }
 0x553   :  { %705 = vst.msk [vmem:[%s1291_s4 + $0x20] sm:$0xff] %vm225_vm3, %v698_v33 }

</bundles_post_ra>
